<compile_context>
chip_gen: v7x
topology: tpu7x:2x2x1
jax: 0.10.0
libtpu: 0.0.40
codegen_flags: <defaults>
</compile_context>

<pallas_src>
import jax
import jax.numpy as jnp
from jax.experimental import pallas as pl
from jax.experimental.pallas import tpu as pltpu


_MXU_MIN_CHANNELS = 64  # use the MXU only when min(Cin, Cout) reaches this


def _last_conv_kernel(x_ref, w_ref, b_ref, o_ref):
    # x_ref: (nb, Cin, tile_p)   activations, pixel axis on lanes
    # w_ref: (Cout, Cin)         full (small) weight matrix, resident in VMEM
    # b_ref: (Cout, 1)           bias column
    # o_ref: (nb, Cout, tile_p)  output, pixel axis on lanes (lane-dense stores)
    nb, cin, _ = x_ref.shape
    cout = o_ref.shape[1]

    b = b_ref[...].astype(jnp.float32)  # (Cout, 1)

    if min(cin, cout) < _MXU_MIN_CHANNELS:
        # Tiny contraction: an MXU matmul would use <1% of the systolic array
        # and still pay push + result-FIFO pop latency.  Do the reduction on
        # the VPU as Cin unrolled broadcast-FMAs over the lane-dense pixel
        # tile, vectorized over the nb folded batch rows.  Bias is folded
        # into the first term.  (Explicit f32 cast: v5e has no bf16 VALU.)
        x = x_ref[...].astype(jnp.float32)   # (nb, Cin, tile_p)
        w = w_ref[...].astype(jnp.float32)   # (Cout, Cin)
        acc = w[None, :, 0:1] * x[:, 0:1, :] + b[None]
        for c in range(1, cin):
            acc = acc + w[None, :, c:c + 1] * x[:, c:c + 1, :]
        o_ref[...] = acc.astype(o_ref.dtype)
    else:
        # MXU path: keep the native input dtype (bf16 stays bf16), f32 accum.
        w = w_ref[...]
        for n in range(nb):                   # nb is static; usually 1 here
            acc = jnp.dot(w, x_ref[n], preferred_element_type=jnp.float32)
            o_ref[n] = (acc + b).astype(o_ref.dtype)


def _round_up(x, m):
    return ((x + m - 1) // m) * m


def last_conv_1x1(x_nchw, weight, bias, *, target_step_bytes=4 << 20):
    """1x1 Conv2d forward (PyTorch nn.Conv2d(kernel_size=1) semantics).

    x_nchw: (N, Cin, H, W)
    weight: (Cout, Cin, 1, 1)  (PyTorch Conv2d weight layout)
    bias:   (Cout,)
    returns (N, Cout, H, W)
    """
    N, Cin, H, W = x_nchw.shape
    Cout = weight.shape[0]
    P = H * W
    itemsize = jnp.dtype(x_nchw.dtype).itemsize

    # Free reshapes: NCHW is already contiguous as (N, Cin, H*W).
    x_flat = x_nchw.reshape(N, Cin, P)
    w_mat = weight.reshape(Cout, Cin)
    b_col = bias.reshape(Cout, 1)

    # ---- Tile derivation from a per-step DMA byte target -------------------
    # Count sublane (x8) / lane (x128) padding so the VMEM/DMA estimate is
    # honest for small channel counts.
    cin_pad = _round_up(Cin, 8)
    cout_pad = _round_up(Cout, 8)
    p_ceil = _round_up(P, 128)
    bytes_per_pixel = itemsize * (cin_pad + cout_pad)   # in + out traffic

    if p_ceil * bytes_per_pixel <= target_step_bytes:
        # A whole image underfills the target: take the full pixel axis and
        # fold batch rows into the block (tiny problems -> one grid step).
        tile_p = P
        nb = max(1, min(N, target_step_bytes // (p_ceil * bytes_per_pixel)))
    else:
        # Tile the pixel axis with lane-aligned (multiple-of-128) tiles; the
        # last block may overhang P (reads harmless, writes masked).
        nb = 1
        tile_p = max(128, (target_step_bytes // bytes_per_pixel) // 128 * 128)
        if N == 1:
            # Keep >=2 pixel blocks so both v7x TensorCores get work.
            tile_p = max(128, min(tile_p, _round_up(pl.cdiv(P, 2), 128)))
        tile_p = min(tile_p, p_ceil)

    grid = (pl.cdiv(N, nb), pl.cdiv(P, tile_p))

    # Scoped-VMEM budget: double-buffered in/out blocks + resident params +
    # headroom.  (Raises v5e's 16 MiB scoped default if needed, stays well
    # under v7x's 64 MiB per-core VMEM.)
    block_bytes = nb * (cin_pad + cout_pad) * _round_up(tile_p, 128) * itemsize
    param_bytes = (cout_pad * _round_up(Cin, 128) + cout_pad * 128) * itemsize
    vmem_limit = int(min(max(2 * block_bytes + 4 * param_bytes + (4 << 20),
                             16 << 20), 56 << 20))

    out_flat = pl.pallas_call(
        _last_conv_kernel,
        out_shape=jax.ShapeDtypeStruct((N, Cout, P), x_nchw.dtype),
        grid_spec=pltpu.PrefetchScalarGridSpec(
            num_scalar_prefetch=0,
            grid=grid,
            in_specs=[
                pl.BlockSpec((nb, Cin, tile_p), lambda b, p: (b, 0, p)),
                pl.BlockSpec((Cout, Cin), lambda b, p: (0, 0)),
                pl.BlockSpec((Cout, 1), lambda b, p: (0, 0)),
            ],
            out_specs=pl.BlockSpec((nb, Cout, tile_p), lambda b, p: (b, 0, p)),
        ),
        compiler_params=pltpu.CompilerParams(
            dimension_semantics=("parallel", "parallel"),
            vmem_limit_bytes=vmem_limit),
    )(x_flat, w_mat, b_col)

    # Free reshape back to NCHW spatial dims.
    return out_flat.reshape(N, Cout, H, W)


if __name__ == "__main__":
    # Small shapes consistent with the module: batch=2, in_channels=4,
    # out_channels=8, spatial=16.
    N, Cin, Cout, Hs, Ws = 2, 4, 8, 16, 16

    key = jax.random.PRNGKey(0)
    kx, kw, kb = jax.random.split(key, 3)

    x = jax.random.normal(kx, (N, Cin, Hs, Ws), dtype=jnp.float32)
    # Deterministic param init (PyTorch default is uniform(-1/sqrt(fan_in), ..))
    bound = 1.0 / float(jnp.sqrt(Cin * 1 * 1))
    weight = jax.random.uniform(kw, (Cout, Cin, 1, 1), jnp.float32, -bound, bound)
    bias = jax.random.uniform(kb, (Cout,), jnp.float32, -bound, bound)

    out = last_conv_1x1(x, weight, bias)
    out = jax.block_until_ready(out)

    # Pure-JAX reference check of the 1x1 conv semantics.
    ref = (jnp.einsum("nchw,oc->nohw", x, weight.reshape(Cout, Cin))
           + bias[None, :, None, None])
    assert out.shape == (N, Cout, Hs, Ws)
    assert jnp.allclose(out, ref, atol=1e-5, rtol=1e-5)

    print("KERNEL_OK")
</pallas_src>

<mosaic_0001>
module attributes {stable_mosaic.version = 11 : i64} {
  func.func @_last_conv_kernel(%arg0: i32, %arg1: i32, %arg2: memref<2x4x256xf32, #tpu.memory_space<vmem>>, %arg3: memref<8x4xf32, #tpu.memory_space<vmem>>, %arg4: memref<8x1xf32, #tpu.memory_space<vmem>>, %arg5: memref<2x8x256xf32, #tpu.memory_space<vmem>>) attributes {dimension_semantics = [#tpu.dimension_semantics<parallel>, #tpu.dimension_semantics<parallel>], iteration_bounds = array<i64: 1, 1>, scalar_prefetch = 0 : i64, scratch_operands = 0 : i64, tpu.core_type = #tpu.core_type<tc>, window_params = [{transform_indices = @transform_0, window_bounds = array<i64: 2, 4, 256>}, {pipeline_mode = #tpu.pipeline_mode<synchronous>, transform_indices = @transform_1, window_bounds = array<i64: 8, 4>}, {pipeline_mode = #tpu.pipeline_mode<synchronous>, transform_indices = @transform_2, window_bounds = array<i64: 8, 1>}, {transform_indices = @transform_3, window_bounds = array<i64: 2, 8, 256>}]} {
    %c0 = arith.constant 0 : index
    %c0_0 = arith.constant 0 : index
    %0 = vector.load %arg4[%c0, %c0_0] : memref<8x1xf32, #tpu.memory_space<vmem>>, vector<8x1xf32>
    %c0_1 = arith.constant 0 : index
    %c0_2 = arith.constant 0 : index
    %c0_3 = arith.constant 0 : index
    %1 = vector.load %arg2[%c0_1, %c0_2, %c0_3] : memref<2x4x256xf32, #tpu.memory_space<vmem>>, vector<2x4x256xf32>
    %c0_4 = arith.constant 0 : index
    %c0_5 = arith.constant 0 : index
    %2 = vector.load %arg3[%c0_4, %c0_5] : memref<8x4xf32, #tpu.memory_space<vmem>>, vector<8x4xf32>
    %3 = vector.extract_strided_slice %2 {offsets = [0, 0], sizes = [8, 1], strides = [1, 1]} : vector<8x4xf32> to vector<8x1xf32>
    %4 = vector.shape_cast %3 : vector<8x1xf32> to vector<1x8x1xf32>
    %5 = vector.extract_strided_slice %1 {offsets = [0, 0, 0], sizes = [2, 1, 256], strides = [1, 1, 1]} : vector<2x4x256xf32> to vector<2x1x256xf32>
    %6 = vector.broadcast %4 : vector<1x8x1xf32> to vector<2x8x256xf32>
    %7 = vector.broadcast %5 : vector<2x1x256xf32> to vector<2x8x256xf32>
    %8 = arith.mulf %6, %7 : vector<2x8x256xf32>
    %9 = vector.shape_cast %0 : vector<8x1xf32> to vector<1x8x1xf32>
    %10 = vector.broadcast %9 : vector<1x8x1xf32> to vector<2x8x256xf32>
    %11 = arith.addf %8, %10 : vector<2x8x256xf32>
    %12 = vector.extract_strided_slice %2 {offsets = [0, 1], sizes = [8, 1], strides = [1, 1]} : vector<8x4xf32> to vector<8x1xf32>
    %13 = vector.shape_cast %12 : vector<8x1xf32> to vector<1x8x1xf32>
    %14 = vector.extract_strided_slice %1 {offsets = [0, 1, 0], sizes = [2, 1, 256], strides = [1, 1, 1]} : vector<2x4x256xf32> to vector<2x1x256xf32>
    %15 = vector.broadcast %13 : vector<1x8x1xf32> to vector<2x8x256xf32>
    %16 = vector.broadcast %14 : vector<2x1x256xf32> to vector<2x8x256xf32>
    %17 = arith.mulf %15, %16 : vector<2x8x256xf32>
    %18 = arith.addf %11, %17 : vector<2x8x256xf32>
    %19 = vector.extract_strided_slice %2 {offsets = [0, 2], sizes = [8, 1], strides = [1, 1]} : vector<8x4xf32> to vector<8x1xf32>
    %20 = vector.shape_cast %19 : vector<8x1xf32> to vector<1x8x1xf32>
    %21 = vector.extract_strided_slice %1 {offsets = [0, 2, 0], sizes = [2, 1, 256], strides = [1, 1, 1]} : vector<2x4x256xf32> to vector<2x1x256xf32>
    %22 = vector.broadcast %20 : vector<1x8x1xf32> to vector<2x8x256xf32>
    %23 = vector.broadcast %21 : vector<2x1x256xf32> to vector<2x8x256xf32>
    %24 = arith.mulf %22, %23 : vector<2x8x256xf32>
    %25 = arith.addf %18, %24 : vector<2x8x256xf32>
    %26 = vector.extract_strided_slice %2 {offsets = [0, 3], sizes = [8, 1], strides = [1, 1]} : vector<8x4xf32> to vector<8x1xf32>
    %27 = vector.shape_cast %26 : vector<8x1xf32> to vector<1x8x1xf32>
    %28 = vector.extract_strided_slice %1 {offsets = [0, 3, 0], sizes = [2, 1, 256], strides = [1, 1, 1]} : vector<2x4x256xf32> to vector<2x1x256xf32>
    %29 = vector.broadcast %27 : vector<1x8x1xf32> to vector<2x8x256xf32>
    %30 = vector.broadcast %28 : vector<2x1x256xf32> to vector<2x8x256xf32>
    %31 = arith.mulf %29, %30 : vector<2x8x256xf32>
    %32 = arith.addf %25, %31 : vector<2x8x256xf32>
    %c0_6 = arith.constant 0 : index
    %c0_7 = arith.constant 0 : index
    %c0_8 = arith.constant 0 : index
    %33 = vector.load %arg5[%c0_6, %c0_7, %c0_8] : memref<2x8x256xf32, #tpu.memory_space<vmem>>, vector<2x8x256xf32>
    tpu.vector_store %arg5[%c0_6, %c0_7, %c0_8], %32 {strides = array<i32>} : memref<2x8x256xf32, #tpu.memory_space<vmem>>, vector<2x8x256xf32>,
    return
  }
  func.func @transform_0(%arg0: i32, %arg1: i32) -> (i32, i32, i32) {
    %c0_i32 = arith.constant 0 : i32
    %c0_i32_0 = arith.constant 0 : i32
    return %arg0, %c0_i32, %arg1 : i32, i32, i32
  }
  func.func @transform_1(%arg0: i32, %arg1: i32) -> (i32, i32) {
    %c0_i32 = arith.constant 0 : i32
    %c0_i32_0 = arith.constant 0 : i32
    %c0_i32_1 = arith.constant 0 : i32
    return %c0_i32, %c0_i32_0 : i32, i32
  }
  func.func @transform_2(%arg0: i32, %arg1: i32) -> (i32, i32) {
    %c0_i32 = arith.constant 0 : i32
    %c0_i32_0 = arith.constant 0 : i32
    %c0_i32_1 = arith.constant 0 : i32
    return %c0_i32, %c0_i32_0 : i32, i32
  }
  func.func @transform_3(%arg0: i32, %arg1: i32) -> (i32, i32, i32) {
    %c0_i32 = arith.constant 0 : i32
    %c0_i32_0 = arith.constant 0 : i32
    return %arg0, %c0_i32, %arg1 : i32, i32, i32
  }
}

</mosaic_0001>

<bundles_post_ra>
// kernel: tpu_custom_call.1
= control target key start
LH: loop header
LB: loop body
LE: loop exit
PB: predicated region body
PF: predicated region fallthrough
CT: control target
= control target key end

     0   :  { %v274_v1 = vmov 0   ;;  %v275_v2 = vmov 1   ;;  %s333_s0 = inlined_call_operand.vmem [shape: f32[2,4,256], index: 0, kind: input, shape index: {}]   ;;  %s334_s1 = inlined_call_operand.vmem [shape: f32[8,4], index: 1, kind: input, shape index: {}]   ;;  %s335_s2 = inlined_call_operand.vmem [shape: f32[8,1], index: 2, kind: input, shape index: {}]   ;;  %s336_s3 = inlined_call_operand.hbm [shape: f32[2,8,256], index: 3, kind: output, shape index: {}]  }
   0x1   :  { %v18_v0 = vld [vmem:[%s334_s1] sm:$0xff]  ;;  %246 = vset.pattern.permute.xlu0 %v274_v1  ;;  %247 = vset.pattern.permute.xlu1 %v275_v2 }
   0x2   :  { %8 = vsyncpa [#allocation3], 0  ;;  %21 = vperm.xlu0 %246, %v18_v0   ;;  %76 = vperm.xlu1 %247, %v18_v0   ;;  %v15_v3 = vld [vmem:[%s335_s2] sm:$0xff]  ;;  %v276_v4 = vmov 2   ;;  %v277_v5 = vmov 3   ;;  %v26_v6 = vlaneseq  ;;  %v17_v11 = vld [vmem:[%s333_s0 + $0x8] sm:$0xff] }
   0x3   :  { %v16_v10 = vld [vmem:[%s333_s0] sm:$0xff]  ;;  %s278_s0 = smov [#allocation2]  }
   0x4   :  { %v27_v7 = vshrl.u32 %v26_v6, 7  ;;  %s228_s2 = sshll.u32 %s278_s0, 4  ;;  %s229_s2 = int_to_ptr.vmem [resolvable:$true] %s228_s2 }
   0x5   :  { %s250_s19 = scalar_lea.vmem %s229_s2, 512  ;;  %p255_p1 = scmp.lt.s32.totalorder %s229_s2, %s229_s2 }
   0x6   :  { %68 = vperm.xlu0 %246, %v15_v3   ;;  %248 = vset.pattern.permute.xlu1 %v276_v4  ;;  %v28_v8 = vsub.s32 0, %v27_v7  ;;  %v32_v9 = vsub.s32 4, %v27_v7  ;;  %v81_v12 = vsub.s32 1, %v27_v7  ;;  %v85_v13 = vsub.s32 5, %v27_v7  ;;  %p251_p0 = scmp.ne.s32.totalorder %s229_s2, %s250_s19  ;;  %p256_p2 = scmp.lt.s32.totalorder %s250_s19, %s250_s19 }
   0x7   :  { %124 = vperm.xlu1 %248, %v18_v0   ;;  %v129_v14 = vsub.s32 2, %v27_v7  ;;  %v133_v15 = vsub.s32 6, %v27_v7  ;;  %v313_v16 = vsub.s32 3, %v27_v7  ;;  %v181_v17 = vsub.s32 7, %v27_v7 }
   0x8   :  { %v29_v18 = vrot.slane %v16_v10, %v28_v8  ;;  %v33_v19 = vrot.slane %v16_v10, %v32_v9  ;;  %v37_v20 = vrot.slane %v17_v11, %v28_v8  ;;  %v41_v21 = vrot.slane %v17_v11, %v32_v9  ;;  %p257_p3 = por %p256_p2, %p255_p1 }
   0x9   :  { %v82_v22 = vrot.slane %v16_v10, %v81_v12  ;;  %v86_v23 = vrot.slane %v16_v10, %v85_v13  ;;  %v90_v24 = vrot.slane %v17_v11, %v81_v12  ;;  %v94_v25 = vrot.slane %v17_v11, %v85_v13 }
   0xa   :  { %249 = vset.pattern.permute.xlu0 %v277_v5  ;;  %v130_v26 = vrot.slane %v16_v10, %v129_v14  ;;  %v134_v27 = vrot.slane %v16_v10, %v133_v15  ;;  %v138_v28 = vrot.slane %v17_v11, %v129_v14  ;;  %v142_v29 = vrot.slane %v17_v11, %v133_v15  ;;  %p258_p4 = pnand %p257_p3, %p251_p0 }
   0xb   :  { %172 = vperm.xlu0 %249, %v18_v0   ;;  %v178_v30 = vrot.slane %v16_v10, %v313_v16  ;;  %v182_v31 = vrot.slane %v16_v10, %v181_v17  ;;  %v186_v32 = vrot.slane %v17_v11, %v313_v16  ;;  %v190_v33 = vrot.slane %v17_v11, %v181_v17 }
   0xc   :  { %v49_v34 = vrot.slane %v29_v18, %v28_v8  ;;  %v53_v35 = vrot.slane %v33_v19, %v28_v8  ;;  %v57_v36 = vrot.slane %v37_v20, %v28_v8  ;;  %v61_v37 = vrot.slane %v41_v21, %v28_v8 }
   0xd   :  { %v102_v40 = vrot.slane %v82_v22, %v81_v12  ;;  %v106_v41 = vrot.slane %v86_v23, %v81_v12  ;;  %v110_v42 = vrot.slane %v90_v24, %v81_v12  ;;  %v114_v43 = vrot.slane %v94_v25, %v81_v12 }
   0xe   :  { %v150_v44 = vrot.slane %v130_v26, %v129_v14  ;;  %v154_v45 = vrot.slane %v134_v27, %v129_v14  ;;  %v158_v46 = vrot.slane %v138_v28, %v129_v14  ;;  %v162_v47 = vrot.slane %v142_v29, %v129_v14 }
   0xf   :  { %v198_v48 = vrot.slane %v178_v30, %v313_v16  ;;  %v202_v49 = vrot.slane %v182_v31, %v313_v16  ;;  %v206_v50 = vrot.slane %v186_v32, %v313_v16  ;;  %v210_v51 = vrot.slane %v190_v33, %v313_v16 }
  0x81   :  { %v22_v38 = vpop.permute.xlu0 %21  ;;  %v77_v39 = vpop.permute.xlu1 %76 }
  0x82   :  { %v62_v52 = vmul.f32 %v49_v34, %v22_v38  ;;  %v63_v53 = vmul.f32 %v53_v35, %v22_v38  ;;  %v64_v54 = vmul.f32 %v57_v36, %v22_v38  ;;  %v65_v55 = vmul.f32 %v61_v37, %v22_v38 }
  0x83   :  { %v115_v56 = vmul.f32 %v102_v40, %v77_v39  ;;  %v116_v57 = vmul.f32 %v106_v41, %v77_v39  ;;  %v117_v58 = vmul.f32 %v110_v42, %v77_v39  ;;  %v118_v59 = vmul.f32 %v114_v43, %v77_v39 }
  0x85   :  { %v69_v60 = vpop.permute.xlu0 %68 }
  0x86   :  { %v71_v61 = vadd.f32 %v69_v60, %v62_v52  ;;  %v72_v62 = vadd.f32 %v69_v60, %v63_v53  ;;  %v73_v63 = vadd.f32 %v69_v60, %v64_v54  ;;  %v74_v0 = vadd.f32 %v69_v60, %v65_v55  ;;  %v125_v1 = vpop.permute.xlu1 %124 }
  0x87   :  { %v163_v2 = vmul.f32 %v150_v44, %v125_v1  ;;  %v164_v3 = vmul.f32 %v154_v45, %v125_v1  ;;  %v165_v4 = vmul.f32 %v158_v46, %v125_v1  ;;  %v166_v5 = vmul.f32 %v162_v47, %v125_v1 }
  0x88   :  { %v119_v6 = vadd.f32 %v115_v56, %v71_v61  ;;  %v120_v7 = vadd.f32 %v116_v57, %v72_v62  ;;  %v121_v8 = vadd.f32 %v117_v58, %v73_v63  ;;  %v122_v9 = vadd.f32 %v118_v59, %v74_v0 }
  0x8a   :  { %v167_v10 = vadd.f32 %v163_v2, %v119_v6  ;;  %v168_v11 = vadd.f32 %v164_v3, %v120_v7  ;;  %v169_v12 = vadd.f32 %v165_v4, %v121_v8  ;;  %v170_v13 = vadd.f32 %v166_v5, %v122_v9  ;;  %v173_v14 = vpop.permute.xlu0 %172 }
  0x8b   :  { %v211_v15 = vmul.f32 %v198_v48, %v173_v14  ;;  %v212_v16 = vmul.f32 %v202_v49, %v173_v14  ;;  %v213_v17 = vmul.f32 %v206_v50, %v173_v14  ;;  %v214_v18 = vmul.f32 %v210_v51, %v173_v14 }
  0x8d   :  { %v215_v19 = vadd.f32 %v211_v15, %v167_v10  ;;  %v216_v20 = vadd.f32 %v212_v16, %v168_v11  ;;  %v217_v21 = vadd.f32 %v213_v17, %v169_v12  ;;  %v218_v22 = vadd.f32 %v214_v18, %v170_v13 }
  0x8f   :  { %219 = vst [vmem:[#allocation2] sm:$0xff] %v215_v19  ;;  %220 = vst [vmem:[#allocation2 + $0x8] sm:$0xff] %v216_v20 }
  0x90   :  { %221 = vst [vmem:[#allocation2 + $0x10] sm:$0xff] %v217_v21  ;;  %222 = vst [vmem:[#allocation2 + $0x18] sm:$0xff] %v218_v22 }
  0x91   :  { %261 = shalt.err (!%p258_p4)
}
  0x92   :  { %s262_s22 = scalar_lea.hbm %s336_s3, 512 }
  0x93   :  { %p263_p5 = scmp.ne.s32.totalorder %s336_s3, %s262_s22  ;;  %p266_p6 = scmp.lt.u32.totalorder %s262_s22, %s336_s3 }
  0x95   :  { %p268_p7 = pnand %p266_p6, %p263_p5 }
  0x97   :  { %271 = shalt.err (!%p268_p7)
}
  0x98   :  { %s279_s27 = smov 256   ;;  %s280_s28 = smov 16  }
  0x99   :  { %234 = dma.vmem_to_hbm [thread:$0]  %s229_s2, 512, %s336_s3, [#allocation3], %s279_s27, %s279_s27, %s280_s28  }
  0x9a   :  { %272 = dma.done.wait [#allocation3], 512  }
  0x9b   :  { %273 = vsyncadd [#allocation3], 4294966784 }
  0x9c   :  { %238 = vsyncpa [#allocation3], 1 }

</bundles_post_ra>
